<compile_context>
chip_gen: v5e
topology: v5e:2x2
jax: 0.10.0
libtpu: 0.0.40
codegen_flags: <defaults>
</compile_context>

<pallas_src>
import jax
import jax.numpy as jnp
from jax.experimental import pallas as pl
from jax.experimental.pallas import tpu as pltpu


def _negation_kernel(scaler_ref, x_ref, o_ref):
    # scaler_ref: (1,) f32 in SMEM. Explicit cast keeps the stored dtype == out dtype
    # (avoids implicit f32 promotion problems for bf16 / fp16 / int inputs).
    o_ref[...] = (x_ref[...] * scaler_ref[0]).astype(o_ref.dtype)


def _round_up(n, m):
    return ((n + m - 1) // m) * m


def _chip_tuning():
    """Return (block_target_bytes, vmem_limit_bytes) tuned per TPU generation."""
    try:
        kind = jax.devices()[0].device_kind.lower()
    except Exception:
        kind = ""
    if "v5" in kind:
        return 2 << 20, 32 << 20     # modest blocks; v5e scoped default is 16 MiB
    if "v7" in kind:
        return 8 << 20, 48 << 20     # big blocks to hide per-step overhead; 64 MiB phys
    if "v6" in kind:
        return 4 << 20, 64 << 20     # 128 MiB physical, plenty of headroom
    return 4 << 20, 48 << 20         # conservative default, safe on all generations


def _choose_tile_rows(rows, lane, dtype_bytes, row_align, target_bytes):
    """Row tile: multiple of row_align, ~target_bytes per block, >=2 (even) grid steps
    whenever the row count allows it. Ragged remainder is masked by the cdiv grid."""
    if rows <= row_align:
        return rows                                   # single full-rows block (tiny)
    t = target_bytes // (dtype_bytes * lane)
    t = max(row_align, (t // row_align) * row_align)
    if t >= rows:
        # Prefer at least two grid steps (DMA/compute pipelining + megacore sharding).
        t = max(row_align, _round_up(pl.cdiv(rows, 2), row_align))
    t = min(t, rows)
    # Prefer an even grid count: v7x shards the parallel axis across 2 TensorCores.
    g = pl.cdiv(rows, t)
    if g > 1 and g % 2 == 1:
        alt = max(row_align, _round_up(pl.cdiv(rows, g + 1), row_align))
        if pl.cdiv(rows, alt) % 2 == 0:
            t = alt
    return t


def negation_forward(x, scaler):
    """y = x * scaler  (scaler is a shape-(1,) parameter, like nn.Parameter([-1.0]))."""
    orig_shape = x.shape
    orig_dtype = x.dtype
    total = int(x.size)

    # Empty input: nothing for the kernel to do; keep semantics/dtype.
    if total == 0:
        return (x * scaler[0]).astype(orig_dtype)

    dtype_bytes = jnp.dtype(orig_dtype).itemsize
    row_align = max(8, 32 // max(dtype_bytes, 1))     # 8 f32 / 16 bf16 / 32 int8
    target_bytes, vmem_limit = _chip_tuning()
    scaler_f32 = jnp.asarray(scaler, dtype=jnp.float32).reshape(1)

    # ---- pick a lane-dense 2D view (rows, lane) -------------------------------------
    lane = None
    for cand in (4096, 2048, 1024, 512, 256, 128):
        if total % cand == 0:
            lane = cand
            break

    pad = 0
    if lane is None:
        last = int(orig_shape[-1]) if x.ndim >= 1 else total
        rows_last = total // last if last > 0 else 0
        # Keep the original trailing dim as a full-extent lane if the row axis is
        # tileable and one row-aligned block still fits comfortably in VMEM.
        if rows_last >= row_align and row_align * last * dtype_bytes * 4 <= vmem_limit:
            lane = last
        else:
            # Pathological shape (e.g. odd-length 1-D): pad flat to a 128-multiple lane.
            lane = 512
            pad = (-total) % lane

    flat = x.reshape(-1)
    if pad:
        flat = jnp.pad(flat, (0, pad))
    rows = flat.size // lane
    x2d = flat.reshape(rows, lane)

    tile_rows = _choose_tile_rows(rows, lane, dtype_bytes, row_align, target_bytes)
    grid = (pl.cdiv(rows, tile_rows),)                # ragged last block is masked
    block_shape = (tile_rows, lane)
    index_map = lambda i: (i, 0)

    out2d = pl.pallas_call(
        _negation_kernel,
        out_shape=jax.ShapeDtypeStruct(x2d.shape, orig_dtype),
        grid_spec=pltpu.PrefetchScalarGridSpec(
            num_scalar_prefetch=0,
            grid=grid,
            in_specs=[
                pl.BlockSpec(memory_space=pltpu.SMEM),     # scaler (1,) scalar param
                pl.BlockSpec(block_shape, index_map),      # lane-dense input row tile
            ],
            out_specs=pl.BlockSpec(block_shape, index_map),
        ),
        compiler_params=pltpu.CompilerParams(
            dimension_semantics=("parallel",),             # megacore-shardable axis
            vmem_limit_bytes=vmem_limit,
        ),
        cost_estimate=pl.CostEstimate(
            flops=total,
            bytes_accessed=2 * total * dtype_bytes,
            transcendentals=0,
        ),
    )(scaler_f32, x2d)

    out = out2d.reshape(-1)
    if pad:
        out = out[:total]
    return out.reshape(orig_shape)


if __name__ == "__main__":
    key = jax.random.PRNGKey(0)
    k1, k2, k3, k4 = jax.random.split(key, 4)

    # Deterministic parameter init, matching nn.Parameter(torch.Tensor([-1.0])).
    scaler = jnp.array([-1.0], dtype=jnp.float32)

    # Small NCHW input consistent with the module (single-block path: 2048 elems).
    x_small = jax.random.normal(k1, (2, 4, 16, 16), dtype=jnp.float32)
    y_small = jax.block_until_ready(negation_forward(x_small, scaler))
    assert y_small.shape == x_small.shape and y_small.dtype == x_small.dtype
    assert jnp.array_equal(y_small, x_small * scaler[0])

    # Larger input exercising the tiled / pipelined / megacore path:
    # 8*16*64*128 elems -> (256, 4096) slab, row tiles, cdiv grid (even count).
    x_big = jax.random.normal(k2, (8, 16, 64, 128), dtype=jnp.float32)
    y_big = jax.block_until_ready(negation_forward(x_big, scaler))
    assert y_big.shape == x_big.shape and y_big.dtype == x_big.dtype
    assert jnp.array_equal(y_big, x_big * scaler[0])

    # Awkward shape (size not a multiple of 128) exercising the full-dim-lane + ragged
    # cdiv-grid path: (3,5,7,9) -> (105, 9) slab, 56-row blocks, masked last block.
    x_odd = jax.random.normal(k3, (3, 5, 7, 9), dtype=jnp.float32)
    y_odd = jax.block_until_ready(negation_forward(x_odd, scaler))
    assert y_odd.shape == x_odd.shape and y_odd.dtype == x_odd.dtype
    assert jnp.array_equal(y_odd, x_odd * scaler[0])

    # bf16 input exercising the explicit output-dtype cast (scaler stays f32 in SMEM).
    x_bf16 = jax.random.normal(k4, (2, 4, 16, 16), dtype=jnp.bfloat16)
    y_bf16 = jax.block_until_ready(negation_forward(x_bf16, scaler))
    assert y_bf16.shape == x_bf16.shape and y_bf16.dtype == x_bf16.dtype
    assert jnp.array_equal(y_bf16, (-x_bf16).astype(jnp.bfloat16))

    print("KERNEL_OK")
</pallas_src>

<mosaic_0001>
module attributes {stable_mosaic.version = 11 : i64} {
  func.func @_negation_kernel(%arg0: i32, %arg1: memref<1xf32, #tpu.memory_space<smem>>, %arg2: memref<1x2048xf32, #tpu.memory_space<vmem>>, %arg3: memref<1x2048xf32, #tpu.memory_space<vmem>>) attributes {dimension_semantics = [#tpu.dimension_semantics<parallel>], iteration_bounds = array<i64: 1>, scalar_prefetch = 0 : i64, scratch_operands = 0 : i64, tpu.core_type = #tpu.core_type<tc>, window_params = [{transform_indices = @transform_0, window_bounds = array<i64: 1>}, {transform_indices = @transform_1, window_bounds = array<i64: 1, 2048>}, {transform_indices = @transform_2, window_bounds = array<i64: 1, 2048>}]} {
    %c0 = arith.constant 0 : index
    %c0_0 = arith.constant 0 : index
    %0 = vector.load %arg2[%c0, %c0_0] : memref<1x2048xf32, #tpu.memory_space<vmem>>, vector<1x2048xf32>
    %c0_1 = arith.constant 0 : index
    %1 = memref.load %arg1[%c0_1] : memref<1xf32, #tpu.memory_space<smem>>
    %2 = vector.broadcast %1 : f32 to vector<1x2048xf32>
    %3 = arith.mulf %0, %2 : vector<1x2048xf32>
    %c0_2 = arith.constant 0 : index
    %c0_3 = arith.constant 0 : index
    %4 = vector.load %arg3[%c0_2, %c0_3] : memref<1x2048xf32, #tpu.memory_space<vmem>>, vector<1x2048xf32>
    tpu.vector_store %arg3[%c0_2, %c0_3], %3 {strides = array<i32>} : memref<1x2048xf32, #tpu.memory_space<vmem>>, vector<1x2048xf32>,
    return
  }
  func.func @transform_0(%arg0: i32) -> i32 {
    %c0_i32 = arith.constant 0 : i32
    %c0_i32_0 = arith.constant 0 : i32
    return %c0_i32 : i32
  }
  func.func @transform_1(%arg0: i32) -> (i32, i32) {
    %c0_i32 = arith.constant 0 : i32
    %c0_i32_0 = arith.constant 0 : i32
    return %arg0, %c0_i32 : i32, i32
  }
  func.func @transform_2(%arg0: i32) -> (i32, i32) {
    %c0_i32 = arith.constant 0 : i32
    %c0_i32_0 = arith.constant 0 : i32
    return %arg0, %c0_i32 : i32, i32
  }
}

</mosaic_0001>

<bundles_post_ra>
// kernel: tpu_custom_call.1
= control target key start
LH: loop header
LB: loop body
LE: loop exit
PB: predicated region body
PF: predicated region fallthrough
CT: control target
= control target key end

     0   :  { %8 = vsyncpa [#allocation4], 0  ;;  %s132_s0 = inlined_call_operand.<no memory space> [shape: f32[1], index: 0, kind: input, shape index: {}]   ;;  %s133_s1 = inlined_call_operand.hbm [shape: f32[1,2048], index: 1, kind: input, shape index: {}]   ;;  %s134_s2 = inlined_call_operand.hbm [shape: f32[1,2048], index: 2, kind: output, shape index: {}]  }
   0x1   :  { %9 = vsyncpa [#allocation5], 0  ;;  %s17_s11 = sshll.u32 %s133_s1, 4  ;;  %s106_s12 = smov [#allocation3]   ;;  %s18_s11 = int_to_ptr.hbm [resolvable:$true] %s17_s11 }
   0x2   :  { %s19_s13 = sshll.u32 %s106_s12, 4  ;;  %s20_s13 = int_to_ptr.vmem [resolvable:$true] %s19_s13 }
   0x3   :  { %22 = dma.hbm_to_vmem [thread:$0]  %s18_s11, 256, %s20_s13, [#allocation4]  }
   0x4   :  { %102 = dma.done.wait [#allocation4], 256  }
   0x5   :  { %103 = vsyncadd [#allocation4], 4294967040  ;;  %v30_v0 = vstv %s132_s0  ;;  %s107_s16 = smov [#allocation6]   ;;  %s42_s20 = sshll.u32 %s134_s2, 4  ;;  %v27_v1 = vld [vmem:[#allocation3] sm:$0xff]  ;;  %v28_v2 = vld [vmem:[#allocation3 + $0x8] sm:$0xff]  ;;  %s43_s20 = int_to_ptr.hbm [resolvable:$true] %s42_s20 }
   0x6   :  { %s40_s17 = sshll.u32 %s107_s16, 4  ;;  %v31_v3 = vmul.f32 %v30_v0, %v27_v1  ;;  %v32_v4 = vmul.f32 %v30_v0, %v28_v2  ;;  %s41_s17 = int_to_ptr.vmem [resolvable:$true] %s40_s17 }
   0x8   :  { %33 = vst [vmem:[#allocation6] sm:$0xff] %v31_v3 }
   0x9   :  { %34 = vst [vmem:[#allocation6 + $0x8] sm:$0xff] %v32_v4 }
   0xa   :  { %45 = dma.vmem_to_hbm [thread:$0]  %s41_s17, 256, %s43_s20, [#allocation5]  }
   0xb   :  { %104 = dma.done.wait [#allocation5], 256  }
   0xc   :  { %105 = vsyncadd [#allocation5], 4294967040 }
   0xd   :  { %50 = vsyncpa [#allocation4], 1 }
   0xe   :  { %51 = vsyncpa [#allocation5], 1 }

</bundles_post_ra>
